<compile_context>
chip_gen: v7x
topology: tpu7x:2x2x1
jax: 0.10.0
libtpu: 0.0.40
codegen_flags: <defaults>
</compile_context>

<pallas_src>
import numpy as np
import jax
import jax.numpy as jnp
from jax import lax
from jax.experimental import pallas as pl
from jax.experimental.pallas import tpu as pltpu


# ----------------------------- Pallas kernel --------------------------------

def chart_scores_kernel(x_ref, wlr_ref, blr_ref, w11_ref, w12_ref, w21_ref,
                        w22b_ref, s_ref):
    # x_ref:   (1, Tp, D)  bf16
    # wlr_ref: (D, 2H)     bf16   (Wl | Wr fused)
    # blr_ref: (1, 2H)     f32    (bl | br fused)
    # w11_ref: (H, H)      bf16
    # w12_ref: (1, H)      f32    (column bias vector, W[:H, H])
    # w21_ref: (1, H)      f32    (row bias vector,    W[H, :H])
    # w22b_ref:(1, 1)      f32 in SMEM  (W[H, H] + scalar bias)
    x = x_ref[0]                                                   # (Tp, D) bf16
    h = wlr_ref.shape[1] // 2

    # fused left/right projection: one MXU matmul, f32 accumulate, f32 epilogue
    lr = jnp.dot(x, wlr_ref[...], preferred_element_type=jnp.float32)
    lr = lr + blr_ref[...]
    lr = jnp.where(lr >= 0, lr, 0.1 * lr)                          # LeakyReLU(0.1)
    l = lr[:, :h]                                                  # (Tp, H) f32
    r = lr[:, h:]                                                  # (Tp, H) f32
    lb = l.astype(jnp.bfloat16)
    rb = r.astype(jnp.bfloat16)

    # bilinear with input biases:
    #   S = (L W11 + 1 w21^T) R^T + (L . w12) 1^T + (w22 + bias)
    m = jnp.dot(lb, w11_ref[...], preferred_element_type=jnp.float32)   # (Tp, H)
    m = m + w21_ref[...]                                # fold row-bias (VPU add)
    s = lax.dot_general(m.astype(jnp.bfloat16), rb,
                        dimension_numbers=(((1,), (1,)), ((), ())),
                        preferred_element_type=jnp.float32)             # (Tp, Tp)
    col = jnp.sum(l * w12_ref[...], axis=-1, keepdims=True)             # (Tp, 1)
    s_ref[0] = s + col + w22b_ref[0, 0]


@jax.jit
def chart_scores(x, wl, bl, wr, br, w_bil, bias):
    """x: (B, T, D) f32. Returns scores (B, T, T) f32."""
    B, T, D = x.shape
    H = wl.shape[1]
    H2 = 2 * H
    Tp = pl.cdiv(T, 128) * 128           # lane-dense score tile (>= 128)

    # host/XLA-side weight prep (done once per call, fused by XLA)
    wlr = jnp.concatenate([wl, wr], axis=1).astype(jnp.bfloat16)         # (D, 2H)
    blr = jnp.concatenate([bl, br]).reshape(1, H2).astype(jnp.float32)   # (1, 2H)
    w11 = w_bil[:H, :H].astype(jnp.bfloat16)                             # (H, H)
    w12 = w_bil[:H, H].reshape(1, H).astype(jnp.float32)                 # (1, H)
    w21 = w_bil[H, :H].reshape(1, H).astype(jnp.float32)                 # (1, H)
    w22b = (w_bil[H, H] + bias).reshape(1, 1).astype(jnp.float32)        # SMEM scalar
    xb = jnp.pad(x, ((0, 0), (0, Tp - T), (0, 0))).astype(jnp.bfloat16)  # (B, Tp, D)

    flops = B * (2 * Tp * D * H2 + 2 * Tp * H * H + 2 * Tp * Tp * H)
    bytes_accessed = (xb.size * 2 + wlr.size * 2 + w11.size * 2
                      + (blr.size + w12.size + w21.size + w22b.size) * 4
                      + B * Tp * Tp * 4)

    scores_pad = pl.pallas_call(
        chart_scores_kernel,
        out_shape=jax.ShapeDtypeStruct((B, Tp, Tp), jnp.float32),
        grid_spec=pltpu.PrefetchScalarGridSpec(
            num_scalar_prefetch=0,
            grid=(B,),
            in_specs=[
                pl.BlockSpec((1, Tp, D), lambda b: (b, 0, 0)),     # x (bf16)
                # constant index_maps -> weights stay resident in VMEM
                pl.BlockSpec((D, H2), lambda b: (0, 0)),           # Wl|Wr (bf16)
                pl.BlockSpec((1, H2), lambda b: (0, 0)),           # bl|br (f32)
                pl.BlockSpec((H, H), lambda b: (0, 0)),            # W11 (bf16)
                pl.BlockSpec((1, H), lambda b: (0, 0)),            # w12 row (f32)
                pl.BlockSpec((1, H), lambda b: (0, 0)),            # w21 row (f32)
                pl.BlockSpec(memory_space=pltpu.MemorySpace.SMEM), # w22 + bias
            ],
            out_specs=pl.BlockSpec((1, Tp, Tp), lambda b: (b, 0, 0)),
        ),
        compiler_params=pltpu.CompilerParams(
            dimension_semantics=("parallel",)),
        cost_estimate=pl.CostEstimate(flops=flops, transcendentals=0,
                                      bytes_accessed=bytes_accessed),
    )(xb, wlr, blr, w11, w12, w21, w22b)
    # For long sequences on v7x (64 MiB VMEM) the (Tp,Tp) output should be
    # tiled with a (B, Tq, Tk) grid and an explicit vmem_limit_bytes; at this
    # size a single 128x128 block is tiny.
    return scores_pad[:, :T, :T]


# ------------------------ host-side CKY decoding -----------------------------
# TODO(synk): parse_cky is an external dependency of the original module; a
# standard max-scoring-binary-bracketing CKY is used here on host numpy (as
# the original also runs it on host) — it is not a Pallas kernel.

def parse_cky(score):
    n = score.shape[0]
    if n == 0:
        return []
    chart = np.zeros((n, n))
    split = np.zeros((n, n), dtype=np.int64)
    for i in range(n):
        chart[i, i] = score[i, i]
    for w in range(1, n):
        for i in range(n - w):
            j = i + w
            best, bk = -np.inf, i
            for k in range(i, j):
                v = chart[i, k] + chart[k + 1, j]
                if v > best:
                    best, bk = v, k
            chart[i, j] = score[i, j] + best
            split[i, j] = bk
    spans = []

    def backtrack(i, j):
        spans.append((i, j))
        if i < j:
            k = split[i, j]
            backtrack(i, k)
            backtrack(k + 1, j)

    backtrack(0, n - 1)
    return spans


def chart_parser_forward(lstm_features, mask, params):
    """Mirrors ChartParser.forward: returns ((pred_lefts, pred_rights), scores)."""
    scores = chart_scores(lstm_features, params["wl"], params["bl"],
                          params["wr"], params["br"], params["w_bil"],
                          params["bias"])
    scores_np = np.asarray(jax.block_until_ready(scores))
    mask_np = np.asarray(mask)
    B, T = mask_np.shape
    ret_lefts = np.zeros((B, T), dtype=np.int32)
    ret_rights = np.zeros((B, T), dtype=np.int32)
    for i in range(B):
        length = int(mask_np[i].sum())
        # A full binary bracketing over `length` leaves has 2*length-1 spans;
        # the (B, T) output buffers of the reference module can only hold T,
        # so keep a deterministic (sorted) prefix of T spans.
        spans = sorted(set(parse_cky(scores_np[i, :length, :length])))
        for ii, (j, k) in enumerate(spans[:T]):
            ret_lefts[i, ii] = j
            ret_rights[i, ii] = k
    return (jnp.asarray(ret_lefts), jnp.asarray(ret_rights)), scores


# --------------------------------- main --------------------------------------

if __name__ == "__main__":
    B, T, D, H = 2, 8, 48, 32   # batch, seq, parser._seqrep_dims, hidden_size

    key = jax.random.PRNGKey(0)
    k = jax.random.split(key, 7)
    x = jax.random.normal(k[0], (B, T, D), dtype=jnp.float32)
    mask = jnp.array([[1] * T, [1] * 6 + [0] * 2], dtype=jnp.int32)

    params = {
        "wl":   0.1 * jax.random.normal(k[1], (D, H), dtype=jnp.float32),
        "bl":   0.1 * jax.random.normal(k[2], (H,),   dtype=jnp.float32),
        "wr":   0.1 * jax.random.normal(k[3], (D, H), dtype=jnp.float32),
        "br":   0.1 * jax.random.normal(k[4], (H,),   dtype=jnp.float32),
        # BilinearMatrixAttention(H, H, use_input_biases=True): weight (H+1, H+1)
        "w_bil": 0.1 * jax.random.normal(k[5], (H + 1, H + 1), dtype=jnp.float32),
        "bias": 0.1 * jax.random.normal(k[6], (), dtype=jnp.float32),
    }

    (pred_lefts, pred_rights), scores = chart_parser_forward(x, mask, params)
    jax.block_until_ready(scores)

    # ---------------- correctness checks -------------------------------------
    def leaky(v):
        return jnp.where(v >= 0, v, 0.1 * v)

    bf16, f32 = jnp.bfloat16, jnp.float32
    w_bil = params["w_bil"]
    w11 = w_bil[:H, :H]
    w12 = w_bil[:H, H]
    w21 = w_bil[H, :H]
    w22 = w_bil[H, H]

    # (1) tight check vs. a reference that mirrors the kernel's bf16 operand
    #     casts (f32 accumulation everywhere).
    L = leaky(jnp.einsum("btd,dh->bth", x.astype(bf16), params["wl"].astype(bf16),
                         preferred_element_type=f32) + params["bl"])
    R = leaky(jnp.einsum("btd,dh->bth", x.astype(bf16), params["wr"].astype(bf16),
                         preferred_element_type=f32) + params["br"])
    m = jnp.einsum("bth,hk->btk", L.astype(bf16), w11.astype(bf16),
                   preferred_element_type=f32) + w21
    ref_bf16 = jnp.einsum("btk,bsk->bts", m.astype(bf16), R.astype(bf16),
                          preferred_element_type=f32)
    ref_bf16 = ref_bf16 + jnp.sum(L * w12, axis=-1, keepdims=True) \
        + (w22 + params["bias"])
    np.testing.assert_allclose(np.asarray(scores), np.asarray(ref_bf16),
                               rtol=1e-2, atol=1e-2)

    # (2) loose semantic check vs. the module's exact f32 formulation
    #     ([L,1] @ W @ [R,1]^T + bias); slack covers the bf16 operand casts.
    Lf = leaky(x @ params["wl"] + params["bl"])
    Rf = leaky(x @ params["wr"] + params["br"])
    ones = jnp.ones((B, T, 1), f32)
    L1 = jnp.concatenate([Lf, ones], -1)
    R1 = jnp.concatenate([Rf, ones], -1)
    ref_f32 = jnp.einsum("bti,ij,bsj->bts", L1, w_bil, R1) + params["bias"]
    np.testing.assert_allclose(np.asarray(scores), np.asarray(ref_f32),
                               rtol=1e-1, atol=1e-1)

    assert pred_lefts.shape == (B, T) and pred_rights.shape == (B, T)

    print("KERNEL_OK")
</pallas_src>

<mosaic_0001>
module attributes {stable_mosaic.version = 11 : i64} {
  func.func @chart_scores_kernel(%arg0: i32, %arg1: memref<1x128x48xbf16, #tpu.memory_space<vmem>>, %arg2: memref<48x64xbf16, #tpu.memory_space<vmem>>, %arg3: memref<1x64xf32, #tpu.memory_space<vmem>>, %arg4: memref<32x32xbf16, #tpu.memory_space<vmem>>, %arg5: memref<1x32xf32, #tpu.memory_space<vmem>>, %arg6: memref<1x32xf32, #tpu.memory_space<vmem>>, %arg7: memref<1x1xf32, #tpu.memory_space<smem>>, %arg8: memref<1x128x128xf32, #tpu.memory_space<vmem>>) attributes {dimension_semantics = [#tpu.dimension_semantics<parallel>], iteration_bounds = array<i64: 2>, scalar_prefetch = 0 : i64, scratch_operands = 0 : i64, tpu.core_type = #tpu.core_type<tc>, window_params = [{transform_indices = @transform_0, window_bounds = array<i64: 1, 128, 48>}, {pipeline_mode = #tpu.pipeline_mode<synchronous>, transform_indices = @transform_1, window_bounds = array<i64: 48, 64>}, {pipeline_mode = #tpu.pipeline_mode<synchronous>, transform_indices = @transform_2, window_bounds = array<i64: 1, 64>}, {pipeline_mode = #tpu.pipeline_mode<synchronous>, transform_indices = @transform_3, window_bounds = array<i64: 32, 32>}, {pipeline_mode = #tpu.pipeline_mode<synchronous>, transform_indices = @transform_4, window_bounds = array<i64: 1, 32>}, {pipeline_mode = #tpu.pipeline_mode<synchronous>, transform_indices = @transform_5, window_bounds = array<i64: 1, 32>}, {transform_indices = @transform_6, window_bounds = array<i64: 1, 1>}, {transform_indices = @transform_7, window_bounds = array<i64: 1, 128, 128>}]} {
    %c0 = arith.constant 0 : index
    %c0_0 = arith.constant 0 : index
    %c0_1 = arith.constant 0 : index
    %0 = vector.load %arg1[%c0, %c0_0, %c0_1] : memref<1x128x48xbf16, #tpu.memory_space<vmem>>, vector<1x128x48xbf16>
    %1 = vector.shape_cast %0 : vector<1x128x48xbf16> to vector<128x48xbf16>
    %c0_2 = arith.constant 0 : index
    %c0_3 = arith.constant 0 : index
    %2 = vector.load %arg2[%c0_2, %c0_3] : memref<48x64xbf16, #tpu.memory_space<vmem>>, vector<48x64xbf16>
    %cst = arith.constant dense<0.000000e+00> : vector<128x64xf32>
    %3 = tpu.matmul %1, %2, %cst {dimension_numbers = #tpu.dot_dimension_numbers<[1], [0], [0], [1], [0, 0, 1, 1], [], []>} : vector<128x48xbf16>, vector<48x64xbf16>, vector<128x64xf32> -> vector<128x64xf32>
    %c0_4 = arith.constant 0 : index
    %c0_5 = arith.constant 0 : index
    %4 = vector.load %arg3[%c0_4, %c0_5] : memref<1x64xf32, #tpu.memory_space<vmem>>, vector<1x64xf32>
    %5 = vector.broadcast %4 : vector<1x64xf32> to vector<128x64xf32>
    %6 = arith.addf %3, %5 : vector<128x64xf32>
    %cst_6 = arith.constant 0.000000e+00 : f32
    %7 = vector.broadcast %cst_6 : f32 to vector<128x64xf32>
    %8 = arith.cmpf oge, %6, %7 : vector<128x64xf32>
    %cst_7 = arith.constant 1.000000e-01 : f32
    %9 = vector.broadcast %cst_7 : f32 to vector<128x64xf32>
    %10 = arith.mulf %9, %6 : vector<128x64xf32>
    %11 = arith.select %8, %6, %10 : vector<128x64xi1>, vector<128x64xf32>
    %12 = vector.extract_strided_slice %11 {offsets = [0, 0], sizes = [128, 32], strides = [1, 1]} : vector<128x64xf32> to vector<128x32xf32>
    %13 = vector.extract_strided_slice %11 {offsets = [0, 32], sizes = [128, 32], strides = [1, 1]} : vector<128x64xf32> to vector<128x32xf32>
    %14 = arith.truncf %12 : vector<128x32xf32> to vector<128x32xbf16>
    %15 = arith.truncf %13 : vector<128x32xf32> to vector<128x32xbf16>
    %c0_8 = arith.constant 0 : index
    %c0_9 = arith.constant 0 : index
    %16 = vector.load %arg4[%c0_8, %c0_9] : memref<32x32xbf16, #tpu.memory_space<vmem>>, vector<32x32xbf16>
    %cst_10 = arith.constant dense<0.000000e+00> : vector<128x32xf32>
    %17 = tpu.matmul %14, %16, %cst_10 {dimension_numbers = #tpu.dot_dimension_numbers<[1], [0], [0], [1], [0, 0, 1, 1], [], []>} : vector<128x32xbf16>, vector<32x32xbf16>, vector<128x32xf32> -> vector<128x32xf32>
    %c0_11 = arith.constant 0 : index
    %c0_12 = arith.constant 0 : index
    %18 = vector.load %arg6[%c0_11, %c0_12] : memref<1x32xf32, #tpu.memory_space<vmem>>, vector<1x32xf32>
    %19 = vector.broadcast %18 : vector<1x32xf32> to vector<128x32xf32>
    %20 = arith.addf %17, %19 : vector<128x32xf32>
    %21 = arith.truncf %20 : vector<128x32xf32> to vector<128x32xbf16>
    %cst_13 = arith.constant dense<0.000000e+00> : vector<128x128xf32>
    %22 = tpu.matmul %21, %15, %cst_13 {dimension_numbers = #tpu.dot_dimension_numbers<[1], [1], [0], [0], [0, 0, 1, 0], [], []>} : vector<128x32xbf16>, vector<128x32xbf16>, vector<128x128xf32> -> vector<128x128xf32>
    %c0_14 = arith.constant 0 : index
    %c0_15 = arith.constant 0 : index
    %23 = vector.load %arg5[%c0_14, %c0_15] : memref<1x32xf32, #tpu.memory_space<vmem>>, vector<1x32xf32>
    %24 = vector.broadcast %23 : vector<1x32xf32> to vector<128x32xf32>
    %25 = arith.mulf %12, %24 : vector<128x32xf32>
    %cst_16 = arith.constant dense<0.000000e+00> : vector<128xf32>
    %26 = vector.multi_reduction <add>, %25, %cst_16 [1] : vector<128x32xf32> to vector<128xf32>
    %27 = vector.shape_cast %26 : vector<128xf32> to vector<128x1xf32>
    %28 = vector.broadcast %27 : vector<128x1xf32> to vector<128x128xf32>
    %29 = arith.addf %22, %28 : vector<128x128xf32>
    %c0_17 = arith.constant 0 : index
    %c0_18 = arith.constant 0 : index
    %30 = memref.load %arg7[%c0_17, %c0_18] : memref<1x1xf32, #tpu.memory_space<smem>>
    %31 = vector.broadcast %30 : f32 to vector<128x128xf32>
    %32 = arith.addf %29, %31 : vector<128x128xf32>
    %c0_19 = arith.constant 0 : index
    %c0_20 = arith.constant 0 : index
    %c0_21 = arith.constant 0 : index
    %33 = vector.load %arg8[%c0_19, %c0_20, %c0_21] : memref<1x128x128xf32, #tpu.memory_space<vmem>>, vector<1x128x128xf32>
    %34 = vector.shape_cast %33 : vector<1x128x128xf32> to vector<128x128xf32>
    %35 = vector.shape_cast %32 : vector<128x128xf32> to vector<1x128x128xf32>
    tpu.vector_store %arg8[%c0_19, %c0_20, %c0_21], %35 {strides = array<i32>} : memref<1x128x128xf32, #tpu.memory_space<vmem>>, vector<1x128x128xf32>,
    return
  }
  func.func @transform_0(%arg0: i32) -> (i32, i32, i32) {
    %c0_i32 = arith.constant 0 : i32
    %c0_i32_0 = arith.constant 0 : i32
    %c0_i32_1 = arith.constant 0 : i32
    return %arg0, %c0_i32, %c0_i32_0 : i32, i32, i32
  }
  func.func @transform_1(%arg0: i32) -> (i32, i32) {
    %c0_i32 = arith.constant 0 : i32
    %c0_i32_0 = arith.constant 0 : i32
    %c0_i32_1 = arith.constant 0 : i32
    return %c0_i32, %c0_i32_0 : i32, i32
  }
  func.func @transform_2(%arg0: i32) -> (i32, i32) {
    %c0_i32 = arith.constant 0 : i32
    %c0_i32_0 = arith.constant 0 : i32
    %c0_i32_1 = arith.constant 0 : i32
    return %c0_i32, %c0_i32_0 : i32, i32
  }
  func.func @transform_3(%arg0: i32) -> (i32, i32) {
    %c0_i32 = arith.constant 0 : i32
    %c0_i32_0 = arith.constant 0 : i32
    %c0_i32_1 = arith.constant 0 : i32
    return %c0_i32, %c0_i32_0 : i32, i32
  }
  func.func @transform_4(%arg0: i32) -> (i32, i32) {
    %c0_i32 = arith.constant 0 : i32
    %c0_i32_0 = arith.constant 0 : i32
    %c0_i32_1 = arith.constant 0 : i32
    return %c0_i32, %c0_i32_0 : i32, i32
  }
  func.func @transform_5(%arg0: i32) -> (i32, i32) {
    %c0_i32 = arith.constant 0 : i32
    %c0_i32_0 = arith.constant 0 : i32
    %c0_i32_1 = arith.constant 0 : i32
    return %c0_i32, %c0_i32_0 : i32, i32
  }
  func.func @transform_6(%arg0: i32) -> (i32, i32) {
    %c0_i32 = arith.constant 0 : i32
    %c0_i32_0 = arith.constant 0 : i32
    %c0_i32_1 = arith.constant 0 : i32
    return %c0_i32, %c0_i32_0 : i32, i32
  }
  func.func @transform_7(%arg0: i32) -> (i32, i32, i32) {
    %c0_i32 = arith.constant 0 : i32
    %c0_i32_0 = arith.constant 0 : i32
    %c0_i32_1 = arith.constant 0 : i32
    return %arg0, %c0_i32, %c0_i32_0 : i32, i32, i32
  }
}

</mosaic_0001>

<bundles_post_ra>
// kernel: chart_scores.1
= control target key start
LH: loop header
LB: loop body
LE: loop exit
PB: predicated region body
PF: predicated region fallthrough
CT: control target
= control target key end

     0   :  { %s1274_s26 = smov 0   ;;  %s1473_s0 = inlined_call_operand.vmem [shape: bf16[2,128,48], index: 0, kind: input, shape index: {}]   ;;  %s1474_s1 = inlined_call_operand.vmem [shape: bf16[48,64], index: 1, kind: input, shape index: {}]   ;;  %s1475_s2 = inlined_call_operand.vmem [shape: f32[1,64], index: 2, kind: input, shape index: {}]   ;;  %s1476_s3 = inlined_call_operand.vmem [shape: bf16[32,32], index: 3, kind: input, shape index: {}]   ;;  %s1477_s4 = inlined_call_operand.vmem [shape: f32[1,32], index: 4, kind: input, shape index: {}]   ;;  %s1478_s5 = inlined_call_operand.vmem [shape: f32[1,32], index: 5, kind: input, shape index: {}]   ;;  %s1479_s6 = inlined_call_operand.<no memory space> [shape: f32[1,1], index: 6, kind: input, shape index: {}]   ;;  %s1480_s7 = inlined_call_operand.vmem [shape: f32[2,128,128], index: 7, kind: output, shape index: {}]  }
   0x1   :  { %12 = sst [smem:[#allocation2]] %s1479_s6 }
   0x2 LB: > { %s1028_s27 = sadd.s32 4294967295, %s1228_s26   ;;  %p1032_p0 = scmp.ge.s32.totalorder %s1228_s26, 1  ;;  %s1228_s26 = sphi %s1274_s26, %s18_s26  }
   0x3   : > { %p238_p1 = scmp.lt.s32.totalorder %s1228_s26, 3 }
   0x5   : > { %p239_p2 = pnand %p1032_p0, %p238_p1 }
   0x6   : > { %v1209_v0 = vld [vmem:[%s1474_s1] sm:$0xff] (!%p239_p2)   ;;  %p270_p3 = scmp.lt.s32.totalorder (!%p239_p2), %s1028_s27, 1  ;;  %v1210_v1 = vld [vmem:[%s1474_s1 + $0x8] sm:$0xff] (!%p239_p2)   ;;  %v1211_v2 = vld [vmem:[%s1474_s1 + $0x10] sm:$0xff] (!%p239_p2)   ;;  %vm368_vm0 = vcmask (!%p239_p2), 392192   ;;  %vm569_vm5 = vcmask (!%p239_p2), 261120  }
   0x7   : > { %242 = sbr.rel (%p239_p2) target bundleno = 707 (0x2c3), region = 48  ;;  %1118 = vmatprep.subr.bf16.mxu0 (!%p239_p2), %v1209_v0  ;;  %v1220_v4 = vld [vmem:[%s1476_s3] sm:$0xff] (!%p239_p2)   ;;  %v1221_v7 = vld [vmem:[%s1476_s3 + $0x8] sm:$0xff] (!%p239_p2)   ;;  %s1230_s20 = smov (!%p239_p2), 96  }
   0x8   : > { %1119 = vmatpush3.bf16.msra.mxu0 (!%p239_p2), %v1209_v0  ;;  %v1314_v13 = vld [vmem:[%s1475_s2] ss:$0 sm:$0xff] (!%p239_p2)  ;;  %s939_s25 = sld [smem:[#allocation2]] (!%p239_p2) }
   0x9   : > { %1120 = vmatprep.subr.bf16.mxu0 (!%p239_p2), %v1210_v1 }
   0xc   : > { %1121 = vmatpush3.bf16.msra.mxu0 (!%p239_p2), %v1210_v1 }
   0xd   : > { %1122 = vmatprep.subr.bf16.mxu0 (!%p239_p2), %v1211_v2 }
   0xe   : > { %s1482_s27 = smov (!%p270_p3, %s1028_s27), 1 }
   0xf   : > { %s1079_s10 = sshll.u32 %s1482_s27, 6  ;;  %s1080_s28 = sshll.u32 %s1482_s27, 7 }
  0x10   : > { %s274_s13 = scalar_lea.vmem %s1473_s0, %s1079_s10  ;;  %1123 = vmatpush3.bf16.msra.mxu0 %v1211_v2  ;;  %s1436_s30 = scalar_lea.vmem %s1480_s7, %s1080_s28 }
  0x11   : > { %v1212_v3 = vld [vmem:[%s274_s13] sm:$0xff]   ;;  %v1213_v5 = vld [vmem:[%s274_s13 + $0x8] sm:$0xff]   ;;  %v1214_v6 = vld [vmem:[%s274_s13 + $0x10] sm:$0xff]   ;;  %1140 = vmatprep.subr.bf16.mxu0 %v1220_v4 }
  0x12   : > { %1124 = vmatprep.mubr.msk.bf16.mxu0 %vm368_vm0, %v1212_v3  ;;  %v1215_v8 = vld [vmem:[%s274_s13 + $0x18] sm:$0xff]   ;;  %v1216_v9 = vld [vmem:[%s274_s13 + $0x20] sm:$0xff]   ;;  %v1217_v10 = vld [vmem:[%s274_s13 + $0x28] sm:$0xff]  }
  0x13   : > { %1125 = vmatmul.mubr.msk.bf16.vlgmr.msra.gmra.mrb[0].mxu0 %vm368_vm0, %v1213_v5  ;;  %v1218_v11 = vld [vmem:[%s274_s13 + $0x30] sm:$0xff]   ;;  %v1219_v12 = vld [vmem:[%s274_s13 + $0x38] sm:$0xff]  }
  0x14   : > { %1128 = vmatprep.mubr.msk.bf16.mxu0 %vm368_vm0, %v1214_v6  ;;  %1141 = vmatpush3.bf16.msra.mxu0 %v1220_v4 }
  0x15   : > { %1142 = vmatprep.subr.bf16.mxu0 %v1221_v7 }
  0x18   : > { %1143 = vmatpush3.bf16.msra.mxu0 %v1221_v7 }
  0x1b   : > { %1129 = vmatmul.mubr.msk.bf16.gmra.mrb[4].mxu0 %vm368_vm0, %v1215_v8 }
  0x1c   : > { %1132 = vmatprep.mubr.msk.bf16.mxu0 %vm368_vm0, %v1216_v9 }
  0x23   : > { %1133 = vmatmul.mubr.msk.bf16.gmra.mrb[8].mxu0 %vm368_vm0, %v1217_v10 }
  0x24   : > { %1136 = vmatprep.mubr.msk.bf16.mxu0 %vm368_vm0, %v1218_v11 }
  0x2b   : > { %1137 = vmatmul.mubr.msk.bf16.gmra.mrb[12].mxu0 %vm368_vm0, %v1219_v12 }
  0xe6   : > { %v1126_v14 = vpop.f32.mrb[0].mxu0 }
  0xe7   : > { %v436_v15 = vadd.f32 %v1126_v14, %v1314_v13  ;;  %v427_v16 = vpop.f32.mrb[1].mxu0 }
  0xe8   : > { %v428_v17 = vadd.f32 %v1314_v13, %v427_v16  ;;  %v1127_v18 = vpop.f32.mrb[2].mxu0 }
  0xe9   : > { %v508_v19 = vmul.f32 0.1, %v436_v15  ;;  %v439_v20 = vadd.f32 %v1127_v18, %v1314_v13  ;;  %v430_v21 = vpop.f32.mrb[3].mxu0  ;;  %vm492_vm1 = vcmp.ge.f32.partialorder %v436_v15, 0.0 }
  0xea   : > { %v506_v22 = vmul.f32 0.1, %v428_v17  ;;  %v431_v23 = vadd.f32 %v1314_v13, %v430_v21  ;;  %vm490_vm3 = vcmp.ge.f32.partialorder %v428_v17, 0.0 }
  0xeb   : > { %vm493_vm2 = vcmp.ge.f32.partialorder %v439_v20, 0.0  ;;  %v509_v24 = vmul.f32 0.1, %v439_v20  ;;  %v1320_v26 = vsel %vm492_vm1, %v436_v15, %v508_v19 }
  0xec   : > { %v507_v25 = vmul.f32 0.1, %v431_v23  ;;  %vm491_vm4 = vcmp.ge.f32.partialorder %v431_v23, 0.0  ;;  %v1326_v30 = vsel %vm490_vm3, %v428_v17, %v506_v22 }
  0xed   : > { %v1322_v27 = vsel %vm493_vm2, %v439_v20, %v509_v24 }
  0xee   : > { %v539_v28 = vpack.c.bf16 %v1322_v27, %v1320_v26  ;;  %v1130_v29 = vpop.f32.mrb[4].mxu0  ;;  %v1328_v31 = vsel %vm491_vm4, %v431_v23, %v507_v25 }
  0xef   : > { %v452_v32 = vadd.f32 %v1130_v29, %v1314_v13  ;;  %v443_v33 = vpop.f32.mrb[5].mxu0  ;;  %v538_v34 = vpack.c.bf16 %v1328_v31, %v1326_v30 }
  0xf0   : > { %v444_v35 = vadd.f32 %v1314_v13, %v443_v33  ;;  %v1131_v36 = vpop.f32.mrb[6].mxu0 }
  0xf1   : > { %v512_v37 = vmul.f32 0.1, %v452_v32  ;;  %v455_v38 = vadd.f32 %v1131_v36, %v1314_v13  ;;  %v446_v39 = vpop.f32.mrb[7].mxu0  ;;  %778 = vrot.lane.b32.xlu0 %v538_v34, %s1230_s20  ;;  %1144 = vmatprep.mubr.msk.bf16.mxu0 %vm569_vm5, %v538_v34  ;;  %vm496_vm6 = vcmp.ge.f32.partialorder %v452_v32, 0.0 }
  0xf2   : > { %v510_v40 = vmul.f32 0.1, %v444_v35  ;;  %v447_v41 = vadd.f32 %v1314_v13, %v446_v39  ;;  %1145 = vmatmul.mubr.msk.bf16.vlgmr.msra.gmra.mrb[16].mxu0 %vm569_vm5, %v539_v28  ;;  %vm494_vm8 = vcmp.ge.f32.partialorder %v444_v35, 0.0 }
  0xf3   : > { %vm497_vm7 = vcmp.ge.f32.partialorder %v455_v38, 0.0  ;;  %v513_v42 = vmul.f32 0.1, %v455_v38  ;;  %v1339_v44 = vsel %vm496_vm6, %v452_v32, %v512_v37 }
  0xf4   : > { %v511_v43 = vmul.f32 0.1, %v447_v41  ;;  %vm495_vm9 = vcmp.ge.f32.partialorder %v447_v41, 0.0  ;;  %v1346_v48 = vsel %vm494_vm8, %v444_v35, %v510_v40 }
  0xf5   : > { %v1341_v45 = vsel %vm497_vm7, %v455_v38, %v513_v42  ;;  %780 = vrot.lane.b32.xlu0 %v539_v28, %s1230_s20 }
  0xf6   : > { %v541_v46 = vpack.c.bf16 %v1341_v45, %v1339_v44  ;;  %v1134_v47 = vpop.f32.mrb[8].mxu0  ;;  %v1348_v49 = vsel %vm495_vm9, %v447_v41, %v511_v43 }
  0xf7   : > { %v468_v50 = vadd.f32 %v1134_v47, %v1314_v13  ;;  %v459_v51 = vpop.f32.mrb[9].mxu0  ;;  %v540_v52 = vpack.c.bf16 %v1348_v49, %v1346_v48 }
  0xf8   : > { %v460_v53 = vadd.f32 %v1314_v13, %v459_v51  ;;  %v1135_v54 = vpop.f32.mrb[10].mxu0 }
  0xf9   : > { %v516_v55 = vmul.f32 0.1, %v468_v50  ;;  %v471_v56 = vadd.f32 %v1135_v54, %v1314_v13  ;;  %v462_v57 = vpop.f32.mrb[11].mxu0  ;;  %782 = vrot.lane.b32.xlu1 %v540_v52, %s1230_s20  ;;  %1148 = vmatprep.mubr.msk.bf16.mxu0 %vm569_vm5, %v540_v52  ;;  %vm500_vm10 = vcmp.ge.f32.partialorder %v468_v50, 0.0 }
  0xfa   : > { %v514_v58 = vmul.f32 0.1, %v460_v53  ;;  %v463_v59 = vadd.f32 %v1314_v13, %v462_v57  ;;  %1149 = vmatmul.mubr.msk.bf16.gmra.mrb[20].mxu0 %vm569_vm5, %v541_v46  ;;  %vm498_vm11 = vcmp.ge.f32.partialorder %v460_v53, 0.0 }
  0xfb   : > { %vm501_vm12 = vcmp.ge.f32.partialorder %v471_v56, 0.0  ;;  %v517_v60 = vmul.f32 0.1, %v471_v56  ;;  %v532_v62 = vsel %vm500_vm10, %v468_v50, %v516_v55 }
  0xfc   : > { %vm499_vm13 = vcmp.ge.f32.partialorder %v463_v59, 0.0  ;;  %v515_v61 = vmul.f32 0.1, %v463_v59  ;;  %v530_v2 = vsel %vm498_vm11, %v460_v53, %v514_v58 }
  0xfd   : > { %784 = vrot.lane.b32.xlu1 %v541_v46, %s1230_s20  ;;  %v1360_v63 = vsel %vm501_vm12, %v471_v56, %v517_v60 }
  0xfe   : > { %v1138_v0 = vpop.f32.mrb[12].mxu0  ;;  %v543_v1 = vpack.c.bf16 %v1360_v63, %v532_v62  ;;  %v531_v3 = vsel %vm499_vm13, %v463_v59, %v515_v61 }
  0xff   : > { %v484_v4 = vadd.f32 %v1138_v0, %v1314_v13  ;;  %v475_v5 = vpop.f32.mrb[13].mxu0  ;;  %v542_v6 = vpack.c.bf16 %v531_v3, %v530_v2 }
 0x100   : > { %v476_v7 = vadd.f32 %v1314_v13, %v475_v5  ;;  %v1139_v8 = vpop.f32.mrb[14].mxu0 }
 0x101   : > { %v520_v9 = vmul.f32 0.1, %v484_v4  ;;  %v487_v10 = vadd.f32 %v1139_v8, %v1314_v13  ;;  %v478_v11 = vpop.f32.mrb[15].mxu0  ;;  %788 = vrot.lane.b32.xlu1 %v543_v1, %s1230_s20  ;;  %786 = vrot.lane.b32.xlu0 %v542_v6, %s1230_s20  ;;  %vm504_vm14 = vcmp.ge.f32.partialorder %v484_v4, 0.0  ;;  %v1057_v8 = vld [vmem:[%s1478_s5] ss:$0 sm:$0xff] }
 0x102   : > { %v518_v12 = vmul.f32 0.1, %v476_v7  ;;  %v479_v14 = vadd.f32 %v1314_v13, %v478_v11  ;;  %1152 = vmatprep.mubr.msk.bf16.mxu0 %vm569_vm5, %v542_v6  ;;  %vm502_vm15 = vcmp.ge.f32.partialorder %v476_v7, 0.0  ;;  %v1068_v13 = vld [vmem:[%s1477_s4] ss:$0 sm:$0xff] }
 0x103   : > { %vm505_vm0 = vcmp.ge.f32.partialorder %v487_v10, 0.0  ;;  %v521_v15 = vmul.f32 0.1, %v487_v10  ;;  %1153 = vmatmul.mubr.msk.bf16.gmra.mrb[24].mxu0 %vm569_vm5, %v543_v1  ;;  %v536_v17 = vsel %vm504_vm14, %v484_v4, %v520_v9  ;;  %v706_v23 = vmul.f32 %v1068_v13, %v1326_v30 }
 0x104   : > { %vm503_vm1 = vcmp.ge.f32.partialorder %v479_v14, 0.0  ;;  %v519_v16 = vmul.f32 0.1, %v479_v14  ;;  %v534_v20 = vsel %vm502_vm15, %v476_v7, %v518_v12  ;;  %v707_v25 = vmul.f32 %v1068_v13, %v1328_v31 }
 0x105   : > { %v537_v18 = vsel %vm505_vm0, %v487_v10, %v521_v15  ;;  %v722_v24 = vsel %vm569_vm5, %v706_v23, 0.0  ;;  %v708_v28 = vmul.f32 %v1068_v13, %v1320_v26  ;;  %v710_v33 = vmul.f32 %v1068_v13, %v1346_v48 }
 0x106   : > { %v545_v19 = vpack.c.bf16 %v537_v18, %v536_v17  ;;  %v535_v21 = vsel %vm503_vm1, %v479_v14, %v519_v16  ;;  %v725_v29 = vsel %vm569_vm5, %v707_v25, 0.0  ;;  %v709_v34 = vmul.f32 %v1068_v13, %v1322_v27 }
 0x107   : > { %v544_v22 = vpack.c.bf16 %v535_v21, %v534_v20  ;;  %v728_v32 = vsel %vm569_vm5, %v708_v28, 0.0  ;;  %v734_v35 = vsel %vm569_vm5, %v710_v33, 0.0  ;;  %v712_v36 = vmul.f32 %v1068_v13, %v1339_v44 }
 0x108   : > { %792 = vrot.lane.b32.xlu1 %v545_v19, %s1230_s20  ;;  %v731_v30 = vsel %vm569_vm5, %v709_v34, 0.0  ;;  %v711_v31 = vmul.f32 %v1068_v13, %v1348_v49  ;;  %v714_v38 = vmul.f32 %v1068_v13, %v530_v2  ;;  %v713_v39 = vmul.f32 %v1068_v13, %v1341_v45 }
 0x109   : > { %790 = vrot.lane.b32.xlu0 %v544_v22, %s1230_s20  ;;  %1156 = vmatprep.mubr.msk.bf16.mxu0 %vm569_vm5, %v544_v22  ;;  %v740_v26 = vsel %vm569_vm5, %v712_v36, 0.0  ;;  %v716_v41 = vmul.f32 %v1068_v13, %v532_v62  ;;  %v715_v42 = vmul.f32 %v1068_v13, %v531_v3  ;;  %v718_v46 = vmul.f32 %v1068_v13, %v534_v20 }
 0x10a   : > { %v737_v37 = vsel %vm569_vm5, %v711_v31, 0.0  ;;  %v746_v27 = vsel %vm569_vm5, %v714_v38, 0.0  ;;  %v743_v40 = vsel %vm569_vm5, %v713_v39, 0.0  ;;  %v717_v47 = vmul.f32 %v1068_v13, %v1360_v63 }
 0x10b   : > { %1157 = vmatmul.mubr.msk.bf16.gmra.mrb[28].mxu0 %vm569_vm5, %v545_v19  ;;  %v752_v43 = vsel %vm569_vm5, %v716_v41, 0.0  ;;  %v749_v44 = vsel %vm569_vm5, %v715_v42, 0.0  ;;  %v758_v45 = vsel %vm569_vm5, %v718_v46, 0.0  ;;  %v720_v49 = vmul.f32 %v1068_v13, %v536_v17 }
 0x10c   : > { %v755_v48 = vsel %vm569_vm5, %v717_v47, 0.0  ;;  %v719_v50 = vmul.f32 %v1068_v13, %v535_v21  ;;  %v721_v53 = vmul.f32 %v1068_v13, %v537_v18 }
 0x10d   : > { %v764_v51 = vsel %vm569_vm5, %v720_v49, 0.0 }
 0x10e   : > { %v761_v52 = vsel %vm569_vm5, %v719_v50, 0.0  ;;  %v767_v54 = vsel %vm569_vm5, %v721_v53, 0.0 }
 0x128   : > { %723 = vadd.xlane.f32.xlu0 %v722_v24 }
 0x12c   : > { %726 = vadd.xlane.f32.xlu1 %v725_v29  ;;  %729 = vadd.xlane.f32.xlu0 %v728_v32 }
 0x130   : > { %735 = vadd.xlane.f32.xlu1 %v734_v35  ;;  %732 = vadd.xlane.f32.xlu0 %v731_v30 }
 0x134   : > { %741 = vadd.xlane.f32.xlu1 %v740_v26  ;;  %738 = vadd.xlane.f32.xlu0 %v737_v37 }
 0x138   : > { %747 = vadd.xlane.f32.xlu1 %v746_v27  ;;  %744 = vadd.xlane.f32.xlu0 %v743_v40 }
 0x13c   : > { %753 = vadd.xlane.f32.xlu1 %v752_v43  ;;  %750 = vadd.xlane.f32.xlu0 %v749_v44 }
 0x140   : > { %759 = vadd.xlane.f32.xlu1 %v758_v45  ;;  %756 = vadd.xlane.f32.xlu0 %v755_v48 }
 0x144   : > { %765 = vadd.xlane.f32.xlu1 %v764_v51  ;;  %762 = vadd.xlane.f32.xlu0 %v761_v52 }
 0x148   : > { %768 = vadd.xlane.f32.xlu0 %v767_v54 }
 0x163   : > { %v779_v55 = vpop.permute.xlu0 %778 }
 0x164   : > { %1192 = vmatprep.subr.msk.bf16.mxu1 %vm569_vm5, %v779_v55  ;;  %v819_v56 = vsel %vm569_vm5, %v779_v55, 0 }
 0x165   : > { %1161 = vmatpush3.bf16.xpose.msra.mxu1 %v819_v56  ;;  %v1431_v56 = vstv %s939_s25 }
 0x167   : > { %v781_v57 = vpop.permute.xlu0 %780 }
 0x168   : > { %1193 = vmatprep.subr.msk.bf16.mxu1 %vm569_vm5, %v781_v57  ;;  %v822_v58 = vsel %vm569_vm5, %v781_v57, 0 }
 0x16b   : > { %v783_v59 = vpop.permute.xlu1 %782 }
 0x16c   : > { %v825_v60 = vsel %vm569_vm5, %v783_v59, 0 }
 0x16d   : > { %1163 = vmatpush3.bf16.xpose.msra.mxu1 %v822_v58 }
 0x16e   : > { %1194 = vmatprep.subr.msk.bf16.mxu1 %vm569_vm5, %v783_v59 }
 0x16f   : > { %v785_v61 = vpop.permute.xlu1 %784 }
 0x170   : > { %v828_v62 = vsel %vm569_vm5, %v785_v61, 0 }
 0x173   : > { %v787_v63 = vpop.permute.xlu0 %786  ;;  %v789_v1 = vpop.permute.xlu1 %788 }
 0x174   : > { %v831_v0 = vsel %vm569_vm5, %v787_v63, 0  ;;  %v834_v2 = vsel %vm569_vm5, %v789_v1, 0 }
 0x175   : > { %1165 = vmatpush3.bf16.xpose.msra.mxu1 %v825_v60 }
 0x176   : > { %1195 = vmatprep.subr.msk.bf16.mxu1 %vm569_vm5, %v785_v61 }
 0x17a   : > { %v793_v5 = vpop.permute.xlu1 %792 }
 0x17b   : > { %v791_v3 = vpop.permute.xlu0 %790  ;;  %v840_v6 = vsel %vm569_vm5, %v793_v5, 0 }
 0x17c   : > { %v837_v4 = vsel %vm569_vm5, %v791_v3, 0 }
 0x17d   : > { %1167 = vmatpush3.bf16.xpose.msra.mxu1 %v828_v62 }
 0x17e   : > { %1196 = vmatprep.subr.msk.bf16.mxu1 %vm569_vm5, %v787_v63 }
 0x185   : > { %1169 = vmatpush3.bf16.xpose.msra.mxu1 %v831_v0 }
 0x186   : > { %1197 = vmatprep.subr.msk.bf16.mxu1 %vm569_vm5, %v789_v1 }
 0x18d   : > { %1171 = vmatpush3.bf16.xpose.msra.mxu1 %v834_v2 }
 0x18e   : > { %1198 = vmatprep.subr.msk.bf16.mxu1 %vm569_vm5, %v791_v3 }
 0x195   : > { %1173 = vmatpush3.bf16.xpose.msra.mxu1 %v837_v4 }
 0x196   : > { %1199 = vmatprep.subr.msk.bf16.mxu1 %vm569_vm5, %v793_v5 }
 0x19d   : > { %1175 = vmatpush3.bf16.xpose.msra.mxu1 %v840_v6 }
 0x1b5   : > { %v724_v48 = vpop.xlane.xlu0 %723 }
 0x1b9   : > { %v730_v49 = vpop.xlane.xlu0 %729  ;;  %v727_v50 = vpop.xlane.xlu1 %726 }
 0x1bd   : > { %v733_v51 = vpop.xlane.xlu0 %732  ;;  %v736_v52 = vpop.xlane.xlu1 %735 }
 0x1c1   : > { %v739_v53 = vpop.xlane.xlu0 %738  ;;  %v742_v54 = vpop.xlane.xlu1 %741 }
 0x1c5   : > { %v1146_v7 = vpop.f32.mrb[16].mxu0  ;;  %v745_v59 = vpop.xlane.xlu0 %744 }
 0x1c6   : > { %v628_v9 = vpop.f32.mrb[17].mxu0  ;;  %v637_v11 = vadd.f32 %v1146_v7, %v1057_v8  ;;  %v748_v4 = vpop.xlane.xlu1 %747 }
 0x1c7   : > { %v1147_v10 = vpop.f32.mrb[18].mxu0  ;;  %v629_v15 = vadd.f32 %v1057_v8, %v628_v9 }
 0x1c8   : > { %v640_v12 = vadd.f32 %v1147_v10, %v1057_v8  ;;  %v631_v14 = vpop.f32.mrb[19].mxu0 }
 0x1c9   : > { %v632_v16 = vadd.f32 %v1057_v8, %v631_v14  ;;  %v751_v6 = vpop.xlane.xlu0 %750 }
 0x1ca   : > { %v692_v17 = vpack.c.bf16 %v640_v12, %v637_v11 }
 0x1cb   : > { %v691_v18 = vpack.c.bf16 %v632_v16, %v629_v15  ;;  %v754_v16 = vpop.xlane.xlu1 %753 }
 0x1cd   : > { %v1150_v19 = vpop.f32.mrb[20].mxu0  ;;  %1176 = vmatprep.mubr.msk.bf16.mxu1 %vm569_vm5, %v691_v18 }
 0x1ce   : > { %v644_v20 = vpop.f32.mrb[21].mxu0  ;;  %1177 = vmatmul.mubr.msk.bf16.vlgmr.msra.gmra.mrb[0].mxu1 %vm569_vm5, %v692_v17  ;;  %v653_v22 = vadd.f32 %v1150_v19, %v1057_v8 }
 0x1cf   : > { %v1151_v21 = vpop.f32.mrb[22].mxu0  ;;  %v645_v24 = vadd.f32 %v1057_v8, %v644_v20  ;;  %v757_v20 = vpop.xlane.xlu0 %756 }
 0x1d0   : > { %v656_v13 = vadd.f32 %v1151_v21, %v1057_v8  ;;  %v647_v23 = vpop.f32.mrb[23].mxu0 }
 0x1d1   : > { %v648_v25 = vadd.f32 %v1057_v8, %v647_v23 }
 0x1d2   : > { %v694_v28 = vpack.c.bf16 %v656_v13, %v653_v22 }
 0x1d3   : > { %v693_v29 = vpack.c.bf16 %v648_v25, %v645_v24  ;;  %v760_v24 = vpop.xlane.xlu1 %759 }
 0x1d5   : > { %1180 = vmatprep.mubr.msk.bf16.mxu1 %vm569_vm5, %v693_v29 }
 0x1d6   : > { %v1154_v32 = vpop.f32.mrb[24].mxu0  ;;  %1181 = vmatmul.mubr.msk.bf16.gmra.mrb[4].mxu1 %vm569_vm5, %v694_v28 }
 0x1d7   : > { %v660_v33 = vpop.f32.mrb[25].mxu0  ;;  %v669_v35 = vadd.f32 %v1154_v32, %v1057_v8 }
 0x1d8   : > { %v1155_v34 = vpop.f32.mrb[26].mxu0  ;;  %v661_v31 = vadd.f32 %v1057_v8, %v660_v33 }
 0x1d9   : > { %v672_v30 = vadd.f32 %v1155_v34, %v1057_v8  ;;  %v663_v36 = vpop.f32.mrb[27].mxu0  ;;  %v763_v34 = vpop.xlane.xlu0 %762 }
 0x1da   : > { %v664_v26 = vadd.f32 %v1057_v8, %v663_v36 }
 0x1db   : > { %v696_v37 = vpack.c.bf16 %v672_v30, %v669_v35 }
 0x1dc   : > { %v695_v38 = vpack.c.bf16 %v664_v26, %v661_v31  ;;  %v766_v26 = vpop.xlane.xlu1 %765 }
 0x1de   : > { %v1158_v39 = vpop.f32.mrb[28].mxu0  ;;  %1184 = vmatprep.mubr.msk.bf16.mxu1 %vm569_vm5, %v695_v38 }
 0x1df   : > { %v676_v27 = vpop.f32.mrb[29].mxu0  ;;  %1185 = vmatmul.mubr.msk.bf16.gmra.mrb[8].mxu1 %vm569_vm5, %v696_v37  ;;  %v685_v41 = vadd.f32 %v1158_v39, %v1057_v8 }
 0x1e0   : > { %v1159_v40 = vpop.f32.mrb[30].mxu0  ;;  %v677_v44 = vadd.f32 %v1057_v8, %v676_v27  ;;  %v769_v27 = vpop.xlane.xlu0 %768 }
 0x1e1   : > { %v688_v42 = vadd.f32 %v1159_v40, %v1057_v8  ;;  %v679_v43 = vpop.f32.mrb[31].mxu0 }
 0x1e2   : > { %v680_v46 = vadd.f32 %v1057_v8, %v679_v43 }
 0x1e3   : > { %v698_v47 = vpack.c.bf16 %v688_v42, %v685_v41 }
 0x1e4   : > { %v697_v45 = vpack.c.bf16 %v680_v46, %v677_v44 }
 0x1e6   : > { %1188 = vmatprep.mubr.msk.bf16.mxu1 %vm569_vm5, %v697_v45 }
 0x1e7   : > { %1189 = vmatmul.mubr.msk.bf16.gmra.mrb[12].mxu1 %vm569_vm5, %v698_v47 }
 0x2a1   : > { %v1178_v55 = vpop.f32.mrb[0].mxu1 }
 0x2a2   : > { %v885_v57 = vadd.f32 %v1178_v55, %v730_v49  ;;  %v876_v58 = vpop.f32.mrb[1].mxu1 }
 0x2a3   : > { %v877_v60 = vadd.f32 %v876_v58, %v724_v48  ;;  %v1179_v61 = vpop.f32.mrb[2].mxu1 }
 0x2a4   : > { %v943_v62 = vadd.f32 %v1431_v56, %v885_v57  ;;  %v888_v63 = vadd.f32 %v1179_v61, %v733_v51  ;;  %v879_v0 = vpop.f32.mrb[3].mxu1 }
 0x2a5   : > { %v941_v1 = vadd.f32 %v1431_v56, %v877_v60  ;;  %v880_v2 = vadd.f32 %v879_v0, %v727_v50 }
 0x2a6   : > { %959 = vst [vmem:[%s1436_s30 + $0x10] sm:$0xff] %v943_v62  ;;  %v944_v3 = vadd.f32 %v1431_v56, %v888_v63 }
 0x2a7   : > { %957 = vst [vmem:[%s1436_s30] sm:$0xff] %v941_v1  ;;  %v942_v5 = vadd.f32 %v1431_v56, %v880_v2 }
 0x2a8   : > { %960 = vst [vmem:[%s1436_s30 + $0x18] sm:$0xff] %v944_v3 }
 0x2a9   : > { %958 = vst [vmem:[%s1436_s30 + $0x8] sm:$0xff] %v942_v5  ;;  %v1182_v7 = vpop.f32.mrb[4].mxu1 }
 0x2aa   : > { %v901_v8 = vadd.f32 %v1182_v7, %v742_v54  ;;  %v892_v9 = vpop.f32.mrb[5].mxu1 }
 0x2ab   : > { %v893_v10 = vadd.f32 %v892_v9, %v736_v52  ;;  %v1183_v11 = vpop.f32.mrb[6].mxu1 }
 0x2ac   : > { %v947_v12 = vadd.f32 %v1431_v56, %v901_v8  ;;  %v904_v14 = vadd.f32 %v1183_v11, %v745_v59  ;;  %v895_v15 = vpop.f32.mrb[7].mxu1 }
 0x2ad   : > { %v945_v17 = vadd.f32 %v1431_v56, %v893_v10  ;;  %v896_v18 = vadd.f32 %v895_v15, %v739_v53 }
 0x2ae   : > { %963 = vst [vmem:[%s1436_s30 + $0x30] sm:$0xff] %v947_v12  ;;  %v948_v19 = vadd.f32 %v1431_v56, %v904_v14 }
 0x2af   : > { %961 = vst [vmem:[%s1436_s30 + $0x20] sm:$0xff] %v945_v17  ;;  %v946_v21 = vadd.f32 %v1431_v56, %v896_v18 }
 0x2b0   : > { %964 = vst [vmem:[%s1436_s30 + $0x38] sm:$0xff] %v948_v19 }
 0x2b1   : > { %962 = vst [vmem:[%s1436_s30 + $0x28] sm:$0xff] %v946_v21 }
 0x2b2   : > { %v1186_v22 = vpop.f32.mrb[8].mxu1 }
 0x2b3   : > { %v917_v13 = vadd.f32 %v1186_v22, %v754_v16  ;;  %v908_v23 = vpop.f32.mrb[9].mxu1 }
 0x2b4   : > { %v909_v25 = vadd.f32 %v908_v23, %v748_v4  ;;  %v1187_v28 = vpop.f32.mrb[10].mxu1 }
 0x2b5   : > { %v951_v29 = vadd.f32 %v1431_v56, %v917_v13  ;;  %v920_v32 = vadd.f32 %v1187_v28, %v757_v20  ;;  %v911_v33 = vpop.f32.mrb[11].mxu1 }
 0x2b6   : > { %v949_v35 = vadd.f32 %v1431_v56, %v909_v25  ;;  %v912_v30 = vadd.f32 %v911_v33, %v751_v6 }
 0x2b7   : > { %967 = vst [vmem:[%s1436_s30 + $0x50] sm:$0xff] %v951_v29  ;;  %v952_v36 = vadd.f32 %v1431_v56, %v920_v32 }
 0x2b8   : > { %965 = vst [vmem:[%s1436_s30 + $0x40] sm:$0xff] %v949_v35  ;;  %v950_v31 = vadd.f32 %v1431_v56, %v912_v30 }
 0x2b9   : > { %968 = vst [vmem:[%s1436_s30 + $0x58] sm:$0xff] %v952_v36 }
 0x2ba   : > { %966 = vst [vmem:[%s1436_s30 + $0x48] sm:$0xff] %v950_v31  ;;  %v1190_v37 = vpop.f32.mrb[12].mxu1 }
 0x2bb   : > { %v933_v38 = vadd.f32 %v1190_v37, %v766_v26  ;;  %v924_v39 = vpop.f32.mrb[13].mxu1 }
 0x2bc   : > { %v925_v40 = vadd.f32 %v924_v39, %v760_v24  ;;  %v1191_v41 = vpop.f32.mrb[14].mxu1 }
 0x2bd   : > { %v955_v42 = vadd.f32 %v1431_v56, %v933_v38  ;;  %v936_v43 = vadd.f32 %v1191_v41, %v769_v27  ;;  %v927_v44 = vpop.f32.mrb[15].mxu1 }
 0x2be   : > { %v953_v46 = vadd.f32 %v1431_v56, %v925_v40  ;;  %v928_v47 = vadd.f32 %v927_v44, %v763_v34 }
 0x2bf   : > { %971 = vst [vmem:[%s1436_s30 + $0x70] sm:$0xff] %v955_v42  ;;  %v956_v45 = vadd.f32 %v1431_v56, %v936_v43 }
 0x2c0   : > { %969 = vst [vmem:[%s1436_s30 + $0x60] sm:$0xff] %v953_v46  ;;  %v954_v48 = vadd.f32 %v1431_v56, %v928_v47 }
 0x2c1   : > { %972 = vst [vmem:[%s1436_s30 + $0x78] sm:$0xff] %v956_v45 }
 0x2c2   : > { %970 = vst [vmem:[%s1436_s30 + $0x68] sm:$0xff] %v954_v48 }
 0x2c3 PF: > { %s18_s26 = sadd.s32 1, %s1228_s26  }
 0x2c4   : > { %p15_p4 = scmp.ge.s32.totalorder %s18_s26, 4  }
 0x2c6   :  { %17 = sbr.rel (!%p15_p4) target bundleno = 2 (0x2), region = 78 }

</bundles_post_ra>
